<compile_context>
chip_gen: v7x
topology: tpu7x:2x2x1
jax: 0.10.0
libtpu: 0.0.40
codegen_flags: <defaults>
</compile_context>

<pallas_src>
import jax
import jax.numpy as jnp
from jax import lax
from jax.experimental import pallas as pl
from jax.experimental.pallas import tpu as pltpu


def _round_up(x, m):
    return (x + m - 1) // m * m


_VMEM_LIMIT = 48 * 1024 * 1024  # > v5e 16 MiB scoped default, < v7x 64 MiB physical


# ---------------------------------------------------------------------------
# Pallas kernel 1: tiled matmul, bf16 operands on the MXU, f32 accumulator,
# bias folded into the accumulator init (out = A @ B + bias)
# ---------------------------------------------------------------------------
def _matmul_bias_kernel(a_ref, b_ref, bias_ref, o_ref, acc_ref):
    k = pl.program_id(2)

    @pl.when(k == 0)
    def _():
        acc_ref[...] = jnp.broadcast_to(bias_ref[...], acc_ref.shape)

    acc_ref[...] += jnp.dot(a_ref[...], b_ref[...],
                            preferred_element_type=jnp.float32)

    @pl.when(k == pl.num_programs(2) - 1)
    def _():
        o_ref[...] = acc_ref[...].astype(o_ref.dtype)


def matmul_bias(a, b, bias):
    """a:(M,K) f32, b:(K,N) f32, bias:(N,) f32  ->  (M,N) f32."""
    M, K = a.shape
    K2, N = b.shape
    assert K == K2 and bias.shape == (N,)

    # Per-layer tile selection:
    #  * tm follows the real M (tiny-M layers are not padded to 128 rows),
    #  * tn up to 1024, multiple of 256 (256-wide MXU on v6e/v7x),
    #  * tk up to 2048 keeps the K grid short so weights stream ~once.
    tm = min(_round_up(M, 8), 512)
    tk = min(_round_up(K, 128), 2048)
    tn = min(_round_up(N, 128), 1024)
    if tn > 256:
        tn = _round_up(tn, 256)
    Mp = _round_up(M, tm)
    if Mp == tm and _round_up(N, tn) == tn and tn >= 256:
        tn //= 2  # guarantee >= 2 parallel tiles so both v7x cores get work
    Kp, Np = _round_up(K, tk), _round_up(N, tn)

    a = jnp.pad(a, ((0, Mp - M), (0, Kp - K))).astype(jnp.bfloat16)
    b = jnp.pad(b, ((0, Kp - K), (0, Np - N))).astype(jnp.bfloat16)
    bias2 = jnp.pad(bias, ((0, Np - N),)).reshape(1, Np).astype(jnp.float32)

    out = pl.pallas_call(
        _matmul_bias_kernel,
        out_shape=jax.ShapeDtypeStruct((Mp, Np), jnp.float32),
        grid_spec=pltpu.PrefetchScalarGridSpec(
            num_scalar_prefetch=0,
            grid=(Mp // tm, Np // tn, Kp // tk),
            in_specs=[
                pl.BlockSpec((tm, tk), lambda i, j, k: (i, k)),
                pl.BlockSpec((tk, tn), lambda i, j, k: (k, j)),
                pl.BlockSpec((1, tn), lambda i, j, k: (0, j)),
            ],
            out_specs=pl.BlockSpec((tm, tn), lambda i, j, k: (i, j)),
            scratch_shapes=[pltpu.VMEM((tm, tn), jnp.float32)],
        ),
        compiler_params=pltpu.CompilerParams(
            dimension_semantics=("parallel", "parallel", "arbitrary"),
            vmem_limit_bytes=_VMEM_LIMIT),
    )(a, b, bias2)
    return out[:M, :N]


# ---------------------------------------------------------------------------
# Pallas kernel 2: max over the (small) middle window axis of an (A, k, B)
# view -- used to reduce one pooling axis at a time without stacking copies.
# ---------------------------------------------------------------------------
def _window_max_kernel(x_ref, o_ref):
    o_ref[...] = jnp.max(x_ref[...], axis=1)


def _max_over_middle(x):
    """x: (A, k, B) f32 -> (A, B) f32, max over the middle axis (Pallas)."""
    A, k, B = x.shape
    if k == 1:
        return x.reshape(A, B)
    ta = min(_round_up(A, 8), 128)
    Ap = _round_up(A, ta)
    x = jnp.pad(x, ((0, Ap - A), (0, 0), (0, 0)))
    out = pl.pallas_call(
        _window_max_kernel,
        out_shape=jax.ShapeDtypeStruct((Ap, B), x.dtype),
        grid=(Ap // ta,),
        in_specs=[pl.BlockSpec((ta, k, B), lambda i: (i, 0, 0))],
        out_specs=pl.BlockSpec((ta, B), lambda i: (i, 0)),
        compiler_params=pltpu.CompilerParams(
            dimension_semantics=("parallel",),
            vmem_limit_bytes=_VMEM_LIMIT),
    )(x)
    return out[:A]


# ---------------------------------------------------------------------------
# Conv3d / MaxPool3d / ConvTranspose3d (channels-last) on the Pallas kernels
# ---------------------------------------------------------------------------
def conv3d(x, w, b, stride, padding):
    """x:(N,D,H,W,C) channels-last, w:(Cout,Cin,kd,kh,kw) (PyTorch layout),
    b:(Cout,).  PyTorch Conv3d semantics.  Returns (N,OD,OH,OW,Cout)."""
    N, D, H, W, C = x.shape
    Cout, Cin, kd, kh, kw = w.shape
    assert C == Cin
    sd, sh, sw = stride
    pd, ph, pw = padding
    OD = (D + 2 * pd - kd) // sd + 1
    OH = (H + 2 * ph - kh) // sh + 1
    OW = (W + 2 * pw - kw) // sw + 1
    xp = jnp.pad(x, ((0, 0), (pd, pd), (ph, ph), (pw, pw), (0, 0)))
    # Windows built directly in (N,OD,OH,OW,C,K) order: the reshape below
    # needs no major-axis transpose.
    # TODO(synk): fold this window walk into the matmul K grid axis (strided-
    # window BlockSpecs); at these shapes the stacked windows are <= ~28 MB.
    wins = []
    for dz in range(kd):
        for dy in range(kh):
            for dx in range(kw):
                wins.append(xp[:, dz:dz + (OD - 1) * sd + 1:sd,
                                  dy:dy + (OH - 1) * sh + 1:sh,
                                  dx:dx + (OW - 1) * sw + 1:sw, :])
    p = jnp.stack(wins, axis=-1).reshape(N * OD * OH * OW, C * kd * kh * kw)
    # w.reshape(Cout, Cin*K) columns are (cin, dz, dy, dx) -- same order as p.
    wmat = w.reshape(Cout, Cin * kd * kh * kw).T
    out = matmul_bias(p, wmat, b)
    return out.reshape(N, OD, OH, OW, Cout)


def maxpool3d(x, kernel, stride):
    """x:(N,D,H,W,C) channels-last.  Floor mode, kernel == stride (as used by
    the module): non-overlapping windows, reduced one axis at a time in Pallas
    (all reshapes are contiguous splits/merges -- no transposes, no copies)."""
    assert tuple(kernel) == tuple(stride)
    N, D, H, W, C = x.shape
    kd, kh, kw = kernel
    OD, OH, OW = D // kd, H // kh, W // kw
    x = x[:, :OD * kd, :OH * kh, :OW * kw, :]
    x = _max_over_middle(x.reshape(N * OD * kd * OH * kh * OW, kw, C))
    x = _max_over_middle(x.reshape(N * OD * kd * OH, kh, OW * C))
    x = _max_over_middle(x.reshape(N * OD, kd, OH * OW * C))
    return x.reshape(N, OD, OH, OW, C)


def conv_transpose3d(x, w, b, stride, padding, output_padding):
    """x:(N,D,H,W,Cin) channels-last, w:(Cin,Cout,kd,kh,kw) (PyTorch layout).
    PyTorch ConvTranspose3d semantics via a col2im GEMM: only real input
    positions hit the MXU (no stride-dilation zeros); the k^3 column groups
    are then combined with dilated pads + adds (output tensors are small)."""
    N, D, H, W, Cin = x.shape
    Cin2, Cout, kd, kh, kw = w.shape
    assert Cin == Cin2
    sd, sh, sw = stride
    pd, ph, pw = padding
    opd, oph, opw = output_padding
    OD = (D - 1) * sd - 2 * pd + kd + opd
    OH = (H - 1) * sh - 2 * ph + kh + oph
    OW = (W - 1) * sw - 2 * pw + kw + opw
    K = kd * kh * kw

    cols = matmul_bias(x.reshape(N * D * H * W, Cin),
                       w.reshape(Cin, Cout * K),
                       jnp.zeros((Cout * K,), jnp.float32))
    cols = cols.reshape(N, D, H, W, Cout, kd, kh, kw)

    # Un-cropped output extents (cover both the natural extent and the crop).
    FD = max((D - 1) * sd + kd, pd + OD)
    FH = max((H - 1) * sh + kh, ph + OH)
    FW = max((W - 1) * sw + kw, pw + OW)
    zero = jnp.array(0.0, jnp.float32)
    full = jnp.zeros((N, FD, FH, FW, Cout), jnp.float32)
    for dz in range(kd):
        for dy in range(kh):
            for dx in range(kw):
                contrib = cols[..., dz, dy, dx]           # (N, D, H, W, Cout)
                full = full + lax.pad(
                    contrib, zero,
                    ((0, 0, 0),
                     (dz, FD - dz - ((D - 1) * sd + 1), sd - 1),
                     (dy, FH - dy - ((H - 1) * sh + 1), sh - 1),
                     (dx, FW - dx - ((W - 1) * sw + 1), sw - 1),
                     (0, 0, 0)))
    out = full[:, pd:pd + OD, ph:ph + OH, pw:pw + OW, :]
    return out + b.reshape(1, 1, 1, 1, Cout)


# ---------------------------------------------------------------------------
# Autoencoder parameters + forward (matches the PyTorch module)
# ---------------------------------------------------------------------------
def init_params(key, scale=0.01):
    def nrm(k, shape):
        return scale * jax.random.normal(k, shape, jnp.float32)
    ks = jax.random.split(key, 12)
    return {
        "conv1_w": nrm(ks[0], (1024, 512, 3, 3, 3)),    "conv1_b": nrm(ks[1], (1024,)),
        "conv2_w": nrm(ks[2], (2048, 1024, 4, 4, 4)),   "conv2_b": nrm(ks[3], (2048,)),
        "conv3_w": nrm(ks[4], (2048, 2048, 4, 3, 3)),   "conv3_b": nrm(ks[5], (2048,)),
        "deconv1_w": nrm(ks[6], (2048, 1024, 4, 4, 4)), "deconv1_b": nrm(ks[7], (1024,)),
        "deconv2_w": nrm(ks[8], (1024, 512, 3, 3, 3)),  "deconv2_b": nrm(ks[9], (512,)),
        "deconv3_w": nrm(ks[10], (512, 512, 6, 4, 4)),  "deconv3_b": nrm(ks[11], (512,)),
    }


def autoencoder_forward(p, x):
    # x: (N, C, D, H, W) (PyTorch NCDHW) -> internally channels-last NDHWC.
    x = x.transpose(0, 2, 3, 4, 1)
    # ---- Encoder ----
    x = conv3d(x, p["conv1_w"], p["conv1_b"], (1, 1, 1), (1, 1, 1))
    x = maxpool3d(x, (1, 2, 2), (1, 2, 2))
    x = conv3d(x, p["conv2_w"], p["conv2_b"], (2, 2, 2), (1, 1, 1))
    x = maxpool3d(x, (2, 2, 2), (2, 2, 2))
    x = conv3d(x, p["conv3_w"], p["conv3_b"], (2, 2, 2), (1, 1, 1))
    # ---- Decoder ----
    x = conv_transpose3d(x, p["deconv1_w"], p["deconv1_b"],
                         (2, 2, 2), (1, 1, 1), (1, 1, 1))
    x = conv_transpose3d(x, p["deconv2_w"], p["deconv2_b"],
                         (2, 2, 2), (1, 1, 1), (1, 1, 1))
    x = conv_transpose3d(x, p["deconv3_w"], p["deconv3_b"],
                         (2, 2, 2), (2, 2, 2), (1, 1, 1))
    return x.transpose(0, 4, 1, 2, 3)  # back to NCDHW


# ---------------------------------------------------------------------------
# Tiny correctness checks against lax references (cheap; small shapes)
# ---------------------------------------------------------------------------
def _sanity_checks():
    key = jax.random.PRNGKey(42)
    kx, kw_, kb = jax.random.split(key, 3)
    # Pre-round operands to bf16 so the Pallas (bf16 MXU, f32 acc) path and
    # the f32 lax reference see identical values.
    x = jax.random.normal(kx, (2, 3, 5, 6, 6), jnp.float32)
    x = x.astype(jnp.bfloat16).astype(jnp.float32)
    w = jax.random.normal(kw_, (4, 3, 3, 2, 2), jnp.float32)
    w = w.astype(jnp.bfloat16).astype(jnp.float32)
    b = jax.random.normal(kb, (4,), jnp.float32)

    got = conv3d(x.transpose(0, 2, 3, 4, 1), w, b, (2, 1, 2), (1, 0, 1))
    got = got.transpose(0, 4, 1, 2, 3)
    ref = lax.conv_general_dilated(
        x, w, window_strides=(2, 1, 2), padding=[(1, 1), (0, 0), (1, 1)],
        dimension_numbers=("NCDHW", "OIDHW", "NCDHW"),
        precision=lax.Precision.HIGHEST) + b.reshape(1, -1, 1, 1, 1)
    assert jnp.allclose(got, ref, rtol=1e-3, atol=1e-3), "conv3d mismatch"

    wt = jax.random.normal(kw_, (3, 4, 3, 3, 3), jnp.float32)
    wt = wt.astype(jnp.bfloat16).astype(jnp.float32)
    got_t = conv_transpose3d(x.transpose(0, 2, 3, 4, 1), wt, b,
                             (2, 2, 2), (1, 1, 1), (1, 1, 1))
    got_t = got_t.transpose(0, 4, 1, 2, 3)
    w_dir = jnp.flip(wt, axis=(2, 3, 4)).transpose(1, 0, 2, 3, 4)
    ref_t = lax.conv_general_dilated(
        x, w_dir, window_strides=(1, 1, 1),
        padding=[(1, 2), (1, 2), (1, 2)], lhs_dilation=(2, 2, 2),
        dimension_numbers=("NCDHW", "OIDHW", "NCDHW"),
        precision=lax.Precision.HIGHEST) + b.reshape(1, -1, 1, 1, 1)
    assert jnp.allclose(got_t, ref_t, rtol=1e-3, atol=1e-3), "deconv3d mismatch"

    xpool = jax.random.normal(kb, (2, 6, 6, 8, 8), jnp.float32)   # NDHWC
    got_p = maxpool3d(xpool, (2, 2, 2), (2, 2, 2))
    ref_p = xpool.reshape(2, 3, 2, 3, 2, 4, 2, 8).max(axis=(2, 4, 6))
    assert jnp.allclose(got_p, ref_p), "maxpool3d mismatch"


if __name__ == "__main__":
    _sanity_checks()

    key = jax.random.PRNGKey(0)
    kp, kx = jax.random.split(key)
    params = init_params(kp)
    # Smallest input the encoder geometry admits with the module's fixed
    # channel counts: (batch=1, C=512, D=8, H=8, W=8) -> encoded (1,2048,1,1,1)
    x = jax.random.normal(kx, (1, 512, 8, 8, 8), jnp.float32)

    fwd = jax.jit(autoencoder_forward)
    out = jax.block_until_ready(fwd(params, x))

    assert out.shape == (1, 512, 13, 11, 11), out.shape
    assert out.dtype == jnp.float32
    assert bool(jnp.all(jnp.isfinite(out)))
    print("KERNEL_OK")
</pallas_src>

<mosaic_0001>
module attributes {stable_mosaic.version = 11 : i64} {
  func.func @_matmul_bias_kernel(%arg0: i32, %arg1: i32, %arg2: i32, %arg3: memref<120x128xbf16, #tpu.memory_space<vmem>>, %arg4: memref<128x128xbf16, #tpu.memory_space<vmem>>, %arg5: memref<1x128xf32, #tpu.memory_space<vmem>>, %arg6: memref<120x128xf32, #tpu.memory_space<vmem>>, %arg7: memref<120x128xf32, #tpu.memory_space<vmem>>) attributes {dimension_semantics = [#tpu.dimension_semantics<parallel>, #tpu.dimension_semantics<parallel>, #tpu.dimension_semantics<arbitrary>], iteration_bounds = array<i64: 1, 1, 1>, scalar_prefetch = 0 : i64, scratch_operands = 1 : i64, tpu.core_type = #tpu.core_type<tc>, window_params = [{transform_indices = @transform_0, window_bounds = array<i64: 120, 128>}, {transform_indices = @transform_1, window_bounds = array<i64: 128, 128>}, {transform_indices = @transform_2, window_bounds = array<i64: 1, 128>}, {transform_indices = @transform_3, window_bounds = array<i64: 120, 128>}]} {
    %c0_i32 = arith.constant 0 : i32
    %0 = arith.cmpi eq, %arg2, %c0_i32 : i32
    %1 = arith.extui %0 : i1 to i32
    %c0_i32_0 = arith.constant 0 : i32
    %2 = arith.cmpi ne, %1, %c0_i32_0 : i32
    scf.if %2 {
      %c0_10 = arith.constant 0 : index
      %c0_11 = arith.constant 0 : index
      %12 = vector.load %arg5[%c0_10, %c0_11] : memref<1x128xf32, #tpu.memory_space<vmem>>, vector<1x128xf32>
      %13 = vector.shape_cast %12 : vector<1x128xf32> to vector<1x128xf32>
      %14 = vector.broadcast %13 : vector<1x128xf32> to vector<120x128xf32>
      %c0_12 = arith.constant 0 : index
      %c0_13 = arith.constant 0 : index
      %15 = vector.load %arg7[%c0_12, %c0_13] : memref<120x128xf32, #tpu.memory_space<vmem>>, vector<120x128xf32>
      tpu.vector_store %arg7[%c0_12, %c0_13], %14 {strides = array<i32>} : memref<120x128xf32, #tpu.memory_space<vmem>>, vector<120x128xf32>,
    } else {
    }
    %c0 = arith.constant 0 : index
    %c0_1 = arith.constant 0 : index
    %3 = vector.load %arg7[%c0, %c0_1] : memref<120x128xf32, #tpu.memory_space<vmem>>, vector<120x128xf32>
    %c0_2 = arith.constant 0 : index
    %c0_3 = arith.constant 0 : index
    %4 = vector.load %arg3[%c0_2, %c0_3] : memref<120x128xbf16, #tpu.memory_space<vmem>>, vector<120x128xbf16>
    %c0_4 = arith.constant 0 : index
    %c0_5 = arith.constant 0 : index
    %5 = vector.load %arg4[%c0_4, %c0_5] : memref<128x128xbf16, #tpu.memory_space<vmem>>, vector<128x128xbf16>
    %cst = arith.constant dense<0.000000e+00> : vector<120x128xf32>
    %6 = tpu.matmul %4, %5, %cst {dimension_numbers = #tpu.dot_dimension_numbers<[1], [0], [0], [1], [0, 0, 1, 1], [], []>} : vector<120x128xbf16>, vector<128x128xbf16>, vector<120x128xf32> -> vector<120x128xf32>
    %7 = arith.addf %3, %6 : vector<120x128xf32>
    %c0_6 = arith.constant 0 : index
    %c0_7 = arith.constant 0 : index
    %8 = vector.load %arg7[%c0_6, %c0_7] : memref<120x128xf32, #tpu.memory_space<vmem>>, vector<120x128xf32>
    tpu.vector_store %arg7[%c0_6, %c0_7], %7 {strides = array<i32>} : memref<120x128xf32, #tpu.memory_space<vmem>>, vector<120x128xf32>,
    %c0_i32_8 = arith.constant 0 : i32
    %9 = arith.cmpi eq, %arg2, %c0_i32_8 : i32
    %10 = arith.extui %9 : i1 to i32
    %c0_i32_9 = arith.constant 0 : i32
    %11 = arith.cmpi ne, %10, %c0_i32_9 : i32
    scf.if %11 {
      %c0_10 = arith.constant 0 : index
      %c0_11 = arith.constant 0 : index
      %12 = vector.load %arg7[%c0_10, %c0_11] : memref<120x128xf32, #tpu.memory_space<vmem>>, vector<120x128xf32>
      %c0_12 = arith.constant 0 : index
      %c0_13 = arith.constant 0 : index
      %13 = vector.load %arg6[%c0_12, %c0_13] : memref<120x128xf32, #tpu.memory_space<vmem>>, vector<120x128xf32>
      tpu.vector_store %arg6[%c0_12, %c0_13], %12 {strides = array<i32>} : memref<120x128xf32, #tpu.memory_space<vmem>>, vector<120x128xf32>,
    } else {
    }
    return
  }
  func.func @transform_0(%arg0: i32, %arg1: i32, %arg2: i32) -> (i32, i32) {
    %c0_i32 = arith.constant 0 : i32
    return %arg0, %arg2 : i32, i32
  }
  func.func @transform_1(%arg0: i32, %arg1: i32, %arg2: i32) -> (i32, i32) {
    %c0_i32 = arith.constant 0 : i32
    return %arg2, %arg1 : i32, i32
  }
  func.func @transform_2(%arg0: i32, %arg1: i32, %arg2: i32) -> (i32, i32) {
    %c0_i32 = arith.constant 0 : i32
    %c0_i32_0 = arith.constant 0 : i32
    return %c0_i32, %arg1 : i32, i32
  }
  func.func @transform_3(%arg0: i32, %arg1: i32, %arg2: i32) -> (i32, i32) {
    %c0_i32 = arith.constant 0 : i32
    return %arg0, %arg1 : i32, i32
  }
}

</mosaic_0001>

<bundles_post_ra>
// kernel: tpu_custom_call.1
= control target key start
LH: loop header
LB: loop body
LE: loop exit
PB: predicated region body
PF: predicated region fallthrough
CT: control target
= control target key end

     0   :  { %8 = vsyncpa [#allocation4], 0  ;;  %s629_s0 = inlined_call_operand.hbm [shape: bf16[120,128], index: 0, kind: input, shape index: {}]   ;;  %s630_s1 = inlined_call_operand.hbm [shape: bf16[128,128], index: 1, kind: input, shape index: {}]   ;;  %s631_s2 = inlined_call_operand.vmem [shape: f32[1,128], index: 2, kind: input, shape index: {}]   ;;  %s632_s3 = inlined_call_operand.hbm [shape: f32[120,128], index: 3, kind: output, shape index: {}]  }
   0x1   :  { %9 = vsyncpa [#allocation7], 0 }
   0x2   :  { %10 = vsyncpa [#allocation5], 0  ;;  %s563_s12 = smov [#allocation3]   ;;  %s491_s16 = scalar_lea.hbm %s629_s0, 960 }
   0x3   :  { %s16_s13 = sshll.u32 %s563_s12, 4  ;;  %p492_p0 = scmp.ne.s32.totalorder %s629_s0, %s491_s16  ;;  %s17_s13 = int_to_ptr.vmem [resolvable:$true] %s16_s13 }
   0x4   :  { %p495_p1 = scmp.lt.u32.totalorder %s491_s16, %s629_s0 }
   0x6   :  { %p497_p2 = pnand %p495_p1, %p492_p0 }
   0x8   :  { %500 = shalt.err (!%p497_p2)
}
   0x9   :  { %s501_s21 = scalar_lea.vmem %s17_s13, 960  ;;  %p506_p4 = scmp.lt.s32.totalorder %s17_s13, %s17_s13 }
   0xa   :  { %p502_p3 = scmp.ne.s32.totalorder %s17_s13, %s501_s21  ;;  %p507_p5 = scmp.lt.s32.totalorder %s501_s21, %s501_s21 }
   0xc   :  { %p508_p6 = por %p507_p5, %p506_p4 }
   0xe   :  { %p509_p7 = pnand %p508_p6, %p502_p3 }
  0x10   :  { %512 = shalt.err (!%p509_p7)
}
  0x11   :  { %s564_s22 = smov 64   ;;  %s565_s23 = smov 4  }
  0x12   :  { %22 = dma.hbm_to_vmem [thread:$0]  %s629_s0, 960, %s17_s13, [#allocation4], %s564_s22, %s564_s22, %s565_s23  }
  0x13   :  { %s566_s26 = smov [#allocation6]   ;;  %s513_s30 = scalar_lea.hbm %s630_s1, 1024 }
  0x14   :  { %s28_s27 = sshll.u32 %s566_s26, 4  ;;  %p514_p8 = scmp.ne.s32.totalorder %s630_s1, %s513_s30  ;;  %s29_s27 = int_to_ptr.vmem [resolvable:$true] %s28_s27 }
  0x15   :  { %p517_p9 = scmp.lt.u32.totalorder %s513_s30, %s630_s1 }
  0x17   :  { %p519_p10 = pnand %p517_p9, %p514_p8 }
  0x19   :  { %522 = shalt.err (!%p519_p10)
}
  0x1a   :  { %s523_s8 = scalar_lea.vmem %s29_s27, 1024  ;;  %p528_p12 = scmp.lt.s32.totalorder %s29_s27, %s29_s27 }
  0x1b   :  { %p524_p11 = scmp.ne.s32.totalorder %s29_s27, %s523_s8  ;;  %p529_p13 = scmp.lt.s32.totalorder %s523_s8, %s523_s8 }
  0x1d   :  { %p530_p0 = por %p529_p13, %p528_p12 }
  0x1f   :  { %p531_p1 = pnand %p530_p0, %p524_p11 }
  0x21   :  { %534 = shalt.err (!%p531_p1)
}
  0x22   :  { %34 = dma.hbm_to_vmem [thread:$0]  %s630_s1, 1024, %s29_s27, [#allocation7], %s564_s22, %s564_s22, %s565_s23  }
  0x23   :  { %557 = dma.done.wait [#allocation4], 960  }
  0x24   :  { %558 = vsyncadd [#allocation4], 4294966336 }
  0x25   :  { %559 = dma.done.wait [#allocation7], 1024  }
  0x26   :  { %560 = vsyncadd [#allocation7], 4294966272  ;;  %v475_v0 = vld [vmem:[#allocation6] sm:$0xff]   ;;  %v476_v1 = vld [vmem:[#allocation6 + $0x8] sm:$0xff]  }
  0x27   :  { %420 = vmatprep.subr.bf16.mxu0 %v475_v0  ;;  %452 = vmatprep.subr.bf16.mxu1 %v475_v0  ;;  %v477_v2 = vld [vmem:[#allocation6 + $0x10] sm:$0xff]   ;;  %v478_v3 = vld [vmem:[#allocation6 + $0x18] sm:$0xff]   ;;  %v483_v4 = vld [vmem:[#allocation3] sm:$0xff]  }
  0x28   :  { %421 = vmatpush3.bf16.msra.mxu0 %v475_v0  ;;  %460 = vmatpush3.bf16.msra.mxu1 %v475_v0  ;;  %v484_v5 = vld [vmem:[#allocation3 + $0x20] sm:$0xff]   ;;  %v481_v8 = vld [vmem:[#allocation6 + $0x30] sm:$0xff]   ;;  %v482_v9 = vld [vmem:[#allocation6 + $0x38] sm:$0xff]  }
  0x29   :  { %422 = vmatprep.subr.bf16.mxu0 %v476_v1  ;;  %453 = vmatprep.subr.bf16.mxu1 %v476_v1  ;;  %v479_v6 = vld [vmem:[#allocation6 + $0x20] sm:$0xff]   ;;  %v480_v7 = vld [vmem:[#allocation6 + $0x28] sm:$0xff]   ;;  %v487_v12 = vld [vmem:[#allocation3 + $0x10] sm:$0xff]  }
  0x2a   :  { %436 = vmatprep.mubr.bf16.mxu0 %v483_v4  ;;  %444 = vmatprep.mubr.bf16.mxu1 %v484_v5  ;;  %v485_v10 = vld [vmem:[#allocation3 + $0x8] sm:$0xff]   ;;  %v488_v13 = vld [vmem:[#allocation3 + $0x30] sm:$0xff]   ;;  %v489_v14 = vld [vmem:[#allocation3 + $0x18] sm:$0xff]  }
  0x2b   :  { %v486_v11 = vld [vmem:[#allocation3 + $0x28] sm:$0xff]   ;;  %v490_v15 = vld [vmem:[#allocation3 + $0x38] ss:$0 sps:$4 sm:$0xff]   ;;  %v387_v16 = vld [vmem:[%s631_s2] ss:$0 sm:$0xff]  ;;  %s567_s2 = smov [#allocation8]  }
  0x2c   :  { %423 = vmatpush3.bf16.msra.mxu0 %v476_v1  ;;  %461 = vmatpush3.bf16.msra.mxu1 %v476_v1  ;;  %s374_s11 = sshll.u32 %s567_s2, 4  ;;  %s375_s11 = int_to_ptr.vmem [resolvable:$true] %s374_s11 }
  0x2d   :  { %424 = vmatprep.subr.bf16.mxu0 %v477_v2  ;;  %454 = vmatprep.subr.bf16.mxu1 %v477_v2  ;;  %s535_s12 = scalar_lea.vmem %s375_s11, 1920  ;;  %p540_p3 = scmp.lt.s32.totalorder %s375_s11, %s375_s11 }
  0x2e   :  { %p536_p2 = scmp.ne.s32.totalorder %s375_s11, %s535_s12  ;;  %p541_p4 = scmp.lt.s32.totalorder %s535_s12, %s535_s12 }
  0x30   :  { %425 = vmatpush3.bf16.msra.mxu0 %v477_v2  ;;  %462 = vmatpush3.bf16.msra.mxu1 %v477_v2  ;;  %p542_p5 = por %p541_p4, %p540_p3 }
  0x31   :  { %426 = vmatprep.subr.bf16.mxu0 %v478_v3  ;;  %455 = vmatprep.subr.bf16.mxu1 %v478_v3 }
  0x32   :  { %p543_p6 = pnand %p542_p5, %p536_p2 }
  0x34   :  { %427 = vmatpush3.bf16.msra.mxu0 %v478_v3  ;;  %463 = vmatpush3.bf16.msra.mxu1 %v478_v3 }
  0x35   :  { %428 = vmatprep.subr.bf16.mxu0 %v479_v6  ;;  %456 = vmatprep.subr.bf16.mxu1 %v479_v6 }
  0x38   :  { %429 = vmatpush3.bf16.msra.mxu0 %v479_v6  ;;  %464 = vmatpush3.bf16.msra.mxu1 %v479_v6 }
  0x39   :  { %430 = vmatprep.subr.bf16.mxu0 %v480_v7  ;;  %457 = vmatprep.subr.bf16.mxu1 %v480_v7 }
  0x3c   :  { %431 = vmatpush3.bf16.msra.mxu0 %v480_v7  ;;  %465 = vmatpush3.bf16.msra.mxu1 %v480_v7 }
  0x3d   :  { %432 = vmatprep.subr.bf16.mxu0 %v481_v8  ;;  %458 = vmatprep.subr.bf16.mxu1 %v481_v8 }
  0x40   :  { %433 = vmatpush3.bf16.msra.mxu0 %v481_v8  ;;  %466 = vmatpush3.bf16.msra.mxu1 %v481_v8 }
  0x41   :  { %434 = vmatprep.subr.bf16.mxu0 %v482_v9  ;;  %459 = vmatprep.subr.bf16.mxu1 %v482_v9 }
  0x44   :  { %435 = vmatpush3.bf16.msra.mxu0 %v482_v9  ;;  %467 = vmatpush3.bf16.msra.mxu1 %v482_v9 }
  0x47   :  { %437 = vmatmul.mubr.bf16.vlgmr.msra.gmra.mrb[0].mxu0 %v485_v10  ;;  %445 = vmatmul.mubr.bf16.vlgmr.msra.gmra.mrb[0].mxu1 %v486_v11 }
  0x48   :  { %440 = vmatprep.mubr.bf16.mxu0 %v487_v12  ;;  %448 = vmatprep.mubr.bf16.mxu1 %v488_v13 }
  0x4f   :  { %441 = vmatmul.mubr.bf16.gmra.mrb[4].mxu0 %v489_v14  ;;  %449 = vmatmul.mubr.bf16.gmra.mrb[4].mxu1 %v490_v15 }
 0x11a   :  { %v438_v17 = vpop.f32.mrb[0].mxu0  ;;  %v446_v18 = vpop.f32.mrb[0].mxu1 }
 0x11b   :  { %v308_v19 = vadd.f32 %v438_v17, %v387_v16  ;;  %v316_v20 = vadd.f32 %v446_v18, %v387_v16  ;;  %v244_v21 = vpop.f32.mrb[1].mxu0  ;;  %v276_v22 = vpop.f32.mrb[1].mxu1 }
 0x11c   :  { %v306_v23 = vadd.f32 %v387_v16, %v244_v21  ;;  %v314_v24 = vadd.f32 %v387_v16, %v276_v22  ;;  %v439_v25 = vpop.f32.mrb[2].mxu0  ;;  %v447_v26 = vpop.f32.mrb[2].mxu1 }
 0x11d   :  { %356 = vst [vmem:[#allocation8 + $0x10] sm:$0xff] %v308_v19  ;;  %364 = vst [vmem:[#allocation8 + $0x50] sm:$0xff] %v316_v20  ;;  %v309_v27 = vadd.f32 %v439_v25, %v387_v16  ;;  %v317_v28 = vadd.f32 %v447_v26, %v387_v16  ;;  %v247_v29 = vpop.f32.mrb[3].mxu0  ;;  %v279_v30 = vpop.f32.mrb[3].mxu1 }
 0x11e   :  { %354 = vst [vmem:[#allocation8] sm:$0xff] %v306_v23  ;;  %362 = vst [vmem:[#allocation8 + $0x40] sm:$0xff] %v314_v24  ;;  %v307_v31 = vadd.f32 %v387_v16, %v247_v29  ;;  %v315_v32 = vadd.f32 %v387_v16, %v279_v30 }
 0x11f   :  { %357 = vst [vmem:[#allocation8 + $0x18] sm:$0xff] %v309_v27  ;;  %365 = vst [vmem:[#allocation8 + $0x58] sm:$0xff] %v317_v28 }
 0x120   :  { %355 = vst [vmem:[#allocation8 + $0x8] sm:$0xff] %v307_v31  ;;  %363 = vst [vmem:[#allocation8 + $0x48] sm:$0xff] %v315_v32 }
 0x122   :  { %v442_v33 = vpop.f32.mrb[4].mxu0  ;;  %v450_v34 = vpop.f32.mrb[4].mxu1 }
 0x123   :  { %v312_v35 = vadd.f32 %v442_v33, %v387_v16  ;;  %v320_v36 = vadd.f32 %v450_v34, %v387_v16  ;;  %v260_v37 = vpop.f32.mrb[5].mxu0  ;;  %v292_v38 = vpop.f32.mrb[5].mxu1 }
 0x124   :  { %v310_v39 = vadd.f32 %v387_v16, %v260_v37  ;;  %v318_v40 = vadd.f32 %v387_v16, %v292_v38  ;;  %v443_v41 = vpop.f32.mrb[6].mxu0  ;;  %v451_v42 = vpop.f32.mrb[6].mxu1 }
 0x125   :  { %360 = vst [vmem:[#allocation8 + $0x30] sm:$0xff] %v312_v35  ;;  %368 = vst [vmem:[#allocation8 + $0x70] sm:$0xff] %v320_v36  ;;  %v313_v43 = vadd.f32 %v443_v41, %v387_v16  ;;  %v263_v44 = vpop.f32.mrb[7].mxu0  ;;  %v295_v45 = vpop.f32.mrb[7].mxu1 }
 0x126   :  { %358 = vst [vmem:[#allocation8 + $0x20] sm:$0xff] %v310_v39  ;;  %366 = vst [vmem:[#allocation8 + $0x60] sm:$0xff] %v318_v40  ;;  %v311_v46 = vadd.f32 %v387_v16, %v263_v44  ;;  %v319_v47 = vadd.f32 %v387_v16, %v295_v45 }
 0x127   :  { %361 = vst [vmem:[#allocation8 + $0x38] sm:$0xff] %v313_v43 }
 0x128   :  { %359 = vst [vmem:[#allocation8 + $0x28] sm:$0xff] %v311_v46  ;;  %367 = vst [vmem:[#allocation8 + $0x68] sm:$0xff] %v319_v47 }
 0x129   :  { %546 = shalt.err (!%p543_p6)
}
 0x12a   :  { %s547_s15 = scalar_lea.hbm %s632_s3, 1920 }
 0x12b   :  { %p548_p7 = scmp.ne.s32.totalorder %s632_s3, %s547_s15  ;;  %p551_p8 = scmp.lt.u32.totalorder %s547_s15, %s632_s3 }
 0x12d   :  { %p553_p9 = pnand %p551_p8, %p548_p7 }
 0x12f   :  { %556 = shalt.err (!%p553_p9)
}
 0x130   :  { %s568_s20 = smov 128   ;;  %s569_s21 = smov 8  }
 0x131   :  { %380 = dma.vmem_to_hbm [thread:$0]  %s375_s11, 1920, %s632_s3, [#allocation5], %s568_s20, %s568_s20, %s569_s21  }
 0x132   :  { %561 = dma.done.wait [#allocation5], 1920  }
 0x133   :  { %562 = vsyncadd [#allocation5], 4294965376 }
 0x134   :  { %384 = vsyncpa [#allocation4], 1 }
 0x135   :  { %385 = vsyncpa [#allocation7], 1 }
 0x136   :  { %386 = vsyncpa [#allocation5], 1 }

</bundles_post_ra>
